<compile_context>
chip_gen: v7x
topology: tpu7x:2x2x1
jax: 0.10.0
libtpu: 0.0.40
codegen_flags: <defaults>
</compile_context>

<pallas_src>
import jax
import jax.numpy as jnp
from jax.experimental import pallas as pl
from jax.experimental.pallas import tpu as pltpu


# --------------------------------------------------------------------------- #
# Pallas kernel: pure HBM-bound broadcast multiply.
#   gate_ref : (bc_t, 1)     per-(batch*channel) sigmoid gate
#   x_ref    : (bc_t, hw_t)  input tile
#   out_ref  : (bc_t, hw_t)  output tile
# --------------------------------------------------------------------------- #
def _scale_kernel(gate_ref, x_ref, out_ref):
    out_ref[...] = (x_ref[...] * gate_ref[...]).astype(out_ref.dtype)


def _round_up(v, a):
    return -(-v // a) * a


def _pick_tile(total, target, align):
    """Largest multiple of `align` (<= target) dividing `total`.

    `total` is always a multiple of `align` (wrapper pads), so this never
    falls back to an oversized single block.
    """
    if total <= target:
        return total
    t = (target // align) * align
    while t >= align:
        if total % t == 0:
            return t
        t -= align
    return total


def aaf_forward(attn_feat, x, params, pool="avg"):
    """Returns (x * weight, x * weight), matching AAF.forward."""
    b, c, n, m = attn_feat.shape
    bx, cx, H, W = x.shape
    assert bx == b and cx == c
    assert pool in ("avg", "max")
    hw = H * W
    bc = b * c

    # ---- gate: tiny (B*C, M) -> (B, C) FFN chain, hoisted to plain XLA -----
    # Mirrors the PyTorch op order exactly (permute+view+AdaptivePool over N).
    if pool == "max":
        pooled = jnp.max(attn_feat, axis=2)
    else:
        pooled = jnp.mean(attn_feat, axis=2)
    pooled = pooled.reshape(bc, m).astype(jnp.float32)               # (B*C, M)
    h = pooled @ params["wf1"].T + params["bf1"]                     # (B*C, HF)
    s = h @ params["wf2"].T + params["bf2"]                          # (B*C, 1)
    v = s.reshape(b, c)                                              # (B, C)
    y = jnp.maximum(v @ params["wh1"].T, 0.0)                        # (B, HR)
    gate = jax.nn.sigmoid(y @ params["wh2"].T)                       # (B, C)
    gate2 = gate.reshape(bc, 1).astype(x.dtype)                      # (B*C, 1)

    # ---- layout: (B*C, H*W), padded lane/sublane-dense ----------------------
    x2 = x.reshape(bc, hw)
    hw_pad = _round_up(hw, 128)
    bc_pad = _round_up(bc, 8)
    if hw_pad != hw or bc_pad != bc:
        x2 = jnp.pad(x2, ((0, bc_pad - bc), (0, hw_pad - hw)))
        gate2 = jnp.pad(gate2, ((0, bc_pad - bc), (0, 0)))

    # ---- tiling: ~4 MiB f32 per streaming tile -------------------------------
    hw_t = _pick_tile(hw_pad, 4096, 128)
    row_budget = max(8, ((1 << 20) // hw_t) // 8 * 8)   # ~1M f32 elems / tile
    bc_t = _pick_tile(bc_pad, row_budget, 8)
    grid = (bc_pad // bc_t, hw_pad // hw_t)

    out = pl.pallas_call(
        _scale_kernel,
        out_shape=jax.ShapeDtypeStruct((bc_pad, hw_pad), x.dtype),
        grid_spec=pltpu.PrefetchScalarGridSpec(
            num_scalar_prefetch=0,
            grid=grid,
            in_specs=[
                pl.BlockSpec((bc_t, 1), lambda i, j: (i, 0)),        # gate
                pl.BlockSpec((bc_t, hw_t), lambda i, j: (i, j)),     # x
            ],
            out_specs=pl.BlockSpec((bc_t, hw_t), lambda i, j: (i, j)),
        ),
        compiler_params=pltpu.CompilerParams(
            # No cross-step dependency anymore: both axes are parallel
            # (shards across the 2 TensorCores on v7x; neutral on v5e/v6e).
            dimension_semantics=("parallel", "parallel"),
            vmem_limit_bytes=48 * 1024 * 1024,
        ),
    )(gate2, x2)

    out = out[:bc, :hw].reshape(b, c, H, W)
    # PyTorch returns x*weight twice; the two outputs are numerically identical.
    return out, out


def _aaf_reference(attn_feat, x, params, pool="avg"):
    """Plain-JAX reference mirroring the PyTorch forward, for validation."""
    b, c, n, m = attn_feat.shape
    if pool == "max":
        pooled = jnp.max(attn_feat, axis=2).reshape(b * c, m)
    else:
        pooled = jnp.mean(attn_feat, axis=2).reshape(b * c, m)
    h = pooled @ params["wf1"].T + params["bf1"]
    s = h @ params["wf2"].T + params["bf2"]
    v = s.reshape(b, c)
    y = jnp.maximum(v @ params["wh1"].T, 0.0)
    w = jax.nn.sigmoid(y @ params["wh2"].T)
    w = w.reshape(b, c, 1, 1)
    return x * w


if __name__ == "__main__":
    # Module hyper-params (defaults: reduction=16, feats_channel=64,
    # feat_reduction=8, pool='avg').
    channel, reduction = 32, 16
    feats_channel, feat_reduction = 64, 8
    hf = feats_channel // feat_reduction      # 8
    hr = channel // reduction                 # 2

    b, n = 2, 8                               # attn_feat: (B, C, N=8, M=64)
    H = W = 16                                # x spatial

    key = jax.random.PRNGKey(0)
    ks = jax.random.split(key, 8)
    params = {
        "wf1": jax.random.normal(ks[0], (hf, feats_channel), jnp.float32) * 0.1,
        "bf1": jax.random.normal(ks[1], (hf,), jnp.float32) * 0.1,
        "wf2": jax.random.normal(ks[2], (1, hf), jnp.float32) * 0.1,
        "bf2": jax.random.normal(ks[3], (1,), jnp.float32) * 0.1,
        "wh1": jax.random.normal(ks[4], (hr, channel), jnp.float32) * 0.1,
        "wh2": jax.random.normal(ks[5], (channel, hr), jnp.float32) * 0.1,
    }
    attn_feat = jax.random.normal(ks[6], (b, channel, n, feats_channel), jnp.float32)
    x = jax.random.normal(ks[7], (b, channel, H, W), jnp.float32)

    out1, out2 = aaf_forward(attn_feat, x, params)
    jax.block_until_ready((out1, out2))

    ref = _aaf_reference(attn_feat, x, params)
    assert jnp.allclose(out1, ref, atol=1e-5, rtol=1e-5)
    assert jnp.allclose(out2, ref, atol=1e-5, rtol=1e-5)

    print("KERNEL_OK")
</pallas_src>

<mosaic_0001>
module attributes {stable_mosaic.version = 11 : i64} {
  func.func @_scale_kernel(%arg0: i32, %arg1: i32, %arg2: memref<64x1xf32, #tpu.memory_space<vmem>>, %arg3: memref<64x256xf32, #tpu.memory_space<vmem>>, %arg4: memref<64x256xf32, #tpu.memory_space<vmem>>) attributes {dimension_semantics = [#tpu.dimension_semantics<parallel>, #tpu.dimension_semantics<parallel>], iteration_bounds = array<i64: 1, 1>, scalar_prefetch = 0 : i64, scratch_operands = 0 : i64, tpu.core_type = #tpu.core_type<tc>, window_params = [{transform_indices = @transform_0, window_bounds = array<i64: 64, 1>}, {transform_indices = @transform_1, window_bounds = array<i64: 64, 256>}, {transform_indices = @transform_2, window_bounds = array<i64: 64, 256>}]} {
    %c0 = arith.constant 0 : index
    %c0_0 = arith.constant 0 : index
    %0 = vector.load %arg3[%c0, %c0_0] : memref<64x256xf32, #tpu.memory_space<vmem>>, vector<64x256xf32>
    %c0_1 = arith.constant 0 : index
    %c0_2 = arith.constant 0 : index
    %1 = vector.load %arg2[%c0_1, %c0_2] : memref<64x1xf32, #tpu.memory_space<vmem>>, vector<64x1xf32>
    %2 = vector.broadcast %1 : vector<64x1xf32> to vector<64x256xf32>
    %3 = arith.mulf %0, %2 : vector<64x256xf32>
    %c0_3 = arith.constant 0 : index
    %c0_4 = arith.constant 0 : index
    %4 = vector.load %arg4[%c0_3, %c0_4] : memref<64x256xf32, #tpu.memory_space<vmem>>, vector<64x256xf32>
    tpu.vector_store %arg4[%c0_3, %c0_4], %3 {strides = array<i32>} : memref<64x256xf32, #tpu.memory_space<vmem>>, vector<64x256xf32>,
    return
  }
  func.func @transform_0(%arg0: i32, %arg1: i32) -> (i32, i32) {
    %c0_i32 = arith.constant 0 : i32
    %c0_i32_0 = arith.constant 0 : i32
    return %arg0, %c0_i32 : i32, i32
  }
  func.func @transform_1(%arg0: i32, %arg1: i32) -> (i32, i32) {
    %c0_i32 = arith.constant 0 : i32
    return %arg0, %arg1 : i32, i32
  }
  func.func @transform_2(%arg0: i32, %arg1: i32) -> (i32, i32) {
    %c0_i32 = arith.constant 0 : i32
    return %arg0, %arg1 : i32, i32
  }
}

</mosaic_0001>

<bundles_post_ra>
// kernel: tpu_custom_call.1
= control target key start
LH: loop header
LB: loop body
LE: loop exit
PB: predicated region body
PF: predicated region fallthrough
CT: control target
= control target key end

     0   :  { %7 = vsyncpa [#allocation3], 0  ;;  %s268_s0 = inlined_call_operand.vmem [shape: f32[64,1], index: 0, kind: input, shape index: {}]   ;;  %s269_s1 = inlined_call_operand.hbm [shape: f32[64,256], index: 1, kind: input, shape index: {}]   ;;  %s270_s2 = inlined_call_operand.hbm [shape: f32[64,256], index: 2, kind: output, shape index: {}]  }
   0x1   :  { %8 = vsyncpa [#allocation4], 0  ;;  %s194_s9 = smov [#allocation2]   ;;  %s146_s13 = scalar_lea.hbm %s269_s1, 2048 }
   0x2   :  { %s16_s10 = sshll.u32 %s194_s9, 4  ;;  %p147_p0 = scmp.ne.s32.totalorder %s269_s1, %s146_s13  ;;  %s17_s10 = int_to_ptr.vmem [resolvable:$true] %s16_s10 }
   0x3   :  { %p150_p1 = scmp.lt.u32.totalorder %s146_s13, %s269_s1 }
   0x5   :  { %p152_p2 = pnand %p150_p1, %p147_p0 }
   0x7   :  { %155 = shalt.err (!%p152_p2)
}
   0x8   :  { %s156_s18 = scalar_lea.vmem %s17_s10, 2048  ;;  %p161_p4 = scmp.lt.s32.totalorder %s17_s10, %s17_s10 }
   0x9   :  { %p157_p3 = scmp.ne.s32.totalorder %s17_s10, %s156_s18  ;;  %p162_p5 = scmp.lt.s32.totalorder %s156_s18, %s156_s18 }
   0xb   :  { %p163_p6 = por %p162_p5, %p161_p4 }
   0xd   :  { %p164_p7 = pnand %p163_p6, %p157_p3 }
   0xf   :  { %167 = shalt.err (!%p164_p7)
}
  0x10   :  { %s195_s19 = smov 256   ;;  %s196_s20 = smov 16  }
  0x11   :  { %22 = dma.hbm_to_vmem [thread:$0]  %s269_s1, 2048, %s17_s10, [#allocation3], %s195_s19, %s195_s19, %s196_s20  }
  0x12   :  { %190 = dma.done.wait [#allocation3], 2048  }
  0x13   :  { %191 = vsyncadd [#allocation3], 4294965248  ;;  %v197_v0 = vmov 0   ;;  %v44_v1 = vld [vmem:[%s268_s0 + $0x10] sm:$0xff]  ;;  %v42_v2 = vld [vmem:[%s268_s0] sm:$0xff] }
  0x14   :  { %145 = vset.pattern.permute.xlu1 %v197_v0  ;;  %144 = vset.pattern.permute.xlu0 %v197_v0  ;;  %v45_v3 = vld [vmem:[%s268_s0 + $0x18] sm:$0xff]  ;;  %v43_v4 = vld [vmem:[%s268_s0 + $0x8] sm:$0xff]  ;;  %v46_v6 = vld [vmem:[%s268_s0 + $0x20] sm:$0xff] }
  0x15   :  { %62 = vperm.xlu1 %145, %v44_v1   ;;  %52 = vperm.xlu0 %144, %v42_v2   ;;  %v47_v5 = vld [vmem:[%s268_s0 + $0x28] sm:$0xff]  ;;  %v49_v7 = vld [vmem:[%s268_s0 + $0x38] sm:$0xff]  ;;  %v48_v8 = vld [vmem:[%s268_s0 + $0x30] sm:$0xff]  ;;  %s198_s0 = smov [#allocation5]  }
  0x16   :  { %v30_v9 = vld [vmem:[#allocation2 + $0x20] sm:$0xff]  ;;  %v31_v10 = vld [vmem:[#allocation2 + $0x28] sm:$0xff]  ;;  %v32_v19 = vld [vmem:[#allocation2 + $0x30] sm:$0xff]  ;;  %s127_s10 = sshll.u32 %s198_s0, 4  ;;  %s128_s10 = int_to_ptr.vmem [resolvable:$true] %s127_s10 }
  0x17   :  { %v26_v11 = vld [vmem:[#allocation2] sm:$0xff]  ;;  %v27_v12 = vld [vmem:[#allocation2 + $0x8] sm:$0xff]  ;;  %v33_v20 = vld [vmem:[#allocation2 + $0x38] sm:$0xff]  ;;  %s168_s11 = scalar_lea.vmem %s128_s10, 2048  ;;  %p173_p9 = scmp.lt.s32.totalorder %s128_s10, %s128_s10 }
  0x18   :  { %v28_v21 = vld [vmem:[#allocation2 + $0x10] sm:$0xff]  ;;  %v29_v22 = vld [vmem:[#allocation2 + $0x18] sm:$0xff]  ;;  %v34_v31 = vld [vmem:[#allocation2 + $0x40] sm:$0xff]  ;;  %p169_p8 = scmp.ne.s32.totalorder %s128_s10, %s168_s11  ;;  %p174_p10 = scmp.lt.s32.totalorder %s168_s11, %s168_s11 }
  0x19   :  { %67 = vperm.xlu1 %145, %v45_v3   ;;  %57 = vperm.xlu0 %144, %v43_v4   ;;  %v36_v29 = vld [vmem:[#allocation2 + $0x50] sm:$0xff]  ;;  %v37_v30 = vld [vmem:[#allocation2 + $0x58] sm:$0xff]  ;;  %v35_v32 = vld [vmem:[#allocation2 + $0x48] sm:$0xff] }
  0x1a   :  { %v40_v39 = vld [vmem:[#allocation2 + $0x70] sm:$0xff]  ;;  %v41_v40 = vld [vmem:[#allocation2 + $0x78] sm:$0xff]  ;;  %v38_v41 = vld [vmem:[#allocation2 + $0x60] sm:$0xff]  ;;  %p175_p11 = por %p174_p10, %p173_p9 }
  0x1b   :  { %v39_v42 = vld [vmem:[#allocation2 + $0x68] sm:$0xff] }
  0x1c   :  { %p176_p12 = pnand %p175_p11, %p169_p8 }
  0x1d   :  { %77 = vperm.xlu1 %145, %v47_v5   ;;  %72 = vperm.xlu0 %144, %v46_v6  }
  0x21   :  { %87 = vperm.xlu1 %145, %v49_v7   ;;  %82 = vperm.xlu0 %144, %v48_v8  }
  0x94   :  { %v63_v13 = vpop.permute.xlu1 %62  ;;  %v53_v14 = vpop.permute.xlu0 %52 }
  0x95   :  { %v94_v15 = vmul.f32 %v63_v13, %v30_v9  ;;  %v95_v16 = vmul.f32 %v63_v13, %v31_v10  ;;  %v90_v17 = vmul.f32 %v53_v14, %v26_v11  ;;  %v91_v18 = vmul.f32 %v53_v14, %v27_v12 }
  0x97   :  { %110 = vst [vmem:[#allocation5 + $0x20] sm:$0xff] %v94_v15  ;;  %111 = vst [vmem:[#allocation5 + $0x28] sm:$0xff] %v95_v16 }
  0x98   :  { %106 = vst [vmem:[#allocation5] sm:$0xff] %v90_v17  ;;  %107 = vst [vmem:[#allocation5 + $0x8] sm:$0xff] %v91_v18  ;;  %v68_v23 = vpop.permute.xlu1 %67  ;;  %v58_v24 = vpop.permute.xlu0 %57 }
  0x99   :  { %v96_v25 = vmul.f32 %v68_v23, %v32_v19  ;;  %v97_v26 = vmul.f32 %v68_v23, %v33_v20  ;;  %v92_v27 = vmul.f32 %v58_v24, %v28_v21  ;;  %v93_v28 = vmul.f32 %v58_v24, %v29_v22 }
  0x9b   :  { %112 = vst [vmem:[#allocation5 + $0x30] sm:$0xff] %v96_v25  ;;  %113 = vst [vmem:[#allocation5 + $0x38] sm:$0xff] %v97_v26 }
  0x9c   :  { %108 = vst [vmem:[#allocation5 + $0x10] sm:$0xff] %v92_v27  ;;  %109 = vst [vmem:[#allocation5 + $0x18] sm:$0xff] %v93_v28  ;;  %v78_v33 = vpop.permute.xlu1 %77  ;;  %v73_v34 = vpop.permute.xlu0 %72 }
  0x9d   :  { %v100_v35 = vmul.f32 %v78_v33, %v36_v29  ;;  %v101_v36 = vmul.f32 %v78_v33, %v37_v30  ;;  %v98_v37 = vmul.f32 %v73_v34, %v34_v31  ;;  %v99_v38 = vmul.f32 %v73_v34, %v35_v32 }
  0x9f   :  { %116 = vst [vmem:[#allocation5 + $0x50] sm:$0xff] %v100_v35  ;;  %117 = vst [vmem:[#allocation5 + $0x58] sm:$0xff] %v101_v36 }
  0xa0   :  { %114 = vst [vmem:[#allocation5 + $0x40] sm:$0xff] %v98_v37  ;;  %115 = vst [vmem:[#allocation5 + $0x48] sm:$0xff] %v99_v38  ;;  %v88_v43 = vpop.permute.xlu1 %87  ;;  %v83_v44 = vpop.permute.xlu0 %82 }
  0xa1   :  { %v104_v45 = vmul.f32 %v88_v43, %v40_v39  ;;  %v105_v46 = vmul.f32 %v88_v43, %v41_v40  ;;  %v102_v47 = vmul.f32 %v83_v44, %v38_v41  ;;  %v103_v48 = vmul.f32 %v83_v44, %v39_v42 }
  0xa3   :  { %120 = vst [vmem:[#allocation5 + $0x70] sm:$0xff] %v104_v45  ;;  %121 = vst [vmem:[#allocation5 + $0x78] sm:$0xff] %v105_v46 }
  0xa4   :  { %118 = vst [vmem:[#allocation5 + $0x60] sm:$0xff] %v102_v47  ;;  %119 = vst [vmem:[#allocation5 + $0x68] sm:$0xff] %v103_v48 }
  0xa5   :  { %179 = shalt.err (!%p176_p12)
}
  0xa6   :  { %s180_s14 = scalar_lea.hbm %s270_s2, 2048 }
  0xa7   :  { %p181_p13 = scmp.ne.s32.totalorder %s270_s2, %s180_s14  ;;  %p184_p0 = scmp.lt.u32.totalorder %s180_s14, %s270_s2 }
  0xa9   :  { %p186_p1 = pnand %p184_p0, %p181_p13 }
  0xab   :  { %189 = shalt.err (!%p186_p1)
}
  0xac   :  { %133 = dma.vmem_to_hbm [thread:$0]  %s128_s10, 2048, %s270_s2, [#allocation4], %s195_s19, %s195_s19, %s196_s20  }
  0xad   :  { %192 = dma.done.wait [#allocation4], 2048  }
  0xae   :  { %193 = vsyncadd [#allocation4], 4294965248 }
  0xaf   :  { %137 = vsyncpa [#allocation3], 1 }
  0xb0   :  { %138 = vsyncpa [#allocation4], 1 }

</bundles_post_ra>
